<compile_context>
chip_gen: v7x
topology: tpu7x:2x2x1
jax: 0.10.0
libtpu: 0.0.40
codegen_flags: <defaults>
</compile_context>

<pallas_src>
import functools

import jax
import jax.numpy as jnp
from jax import lax
from jax.experimental import pallas as pl
from jax.experimental.pallas import tpu as pltpu

LANES = 128
MAX_TILE_ROWS = 8192      # 8192 x 128 f32 = 4 MiB per input per pipeline buffer
CHUNK_ROWS = 1024         # per-chunk compute temporary: 1024 x 128 f32 = 512 KiB
NUM_CORES = 2             # leading "parallel" axis (2 TCs on v7x; neutral on 1-TC chips)


def _round_up(a, m):
    return ((a + m - 1) // m) * m


def _loss_f32(x, t):
    # BCEWithLogits with targets (t+1)/2.  Exactly equivalent (for any t) to the
    # standard stable form  max(x,0) - x*(t+1)/2 + log1p(exp(-|x|)):
    #   max(x,0) - x*(t+1)/2 = 0.5*(|x| - x*t)
    ax = jnp.abs(x)
    return 0.5 * (ax - x * t) + jnp.log1p(jnp.exp(-ax))


def _bce_pm1_kernel(x_ref, t_ref, out_ref, *, tile_rows, chunk_rows, n_chunks,
                    steps, rows, needs_mask):
    p = pl.program_id(0)   # parallel (megacore) axis
    j = pl.program_id(1)   # sequential reduction axis

    @pl.when(j == 0)
    def _init():
        out_ref[...] = jnp.zeros_like(out_ref)

    b = p * steps + j               # logical block index
    block_row0 = b * tile_rows      # first global row covered by this block

    def chunk_sum(c, carry, valid_rows=None):
        r0 = c * chunk_rows
        idx = pl.ds(pl.multiple_of(r0, chunk_rows), chunk_rows)
        x = x_ref[idx, :].astype(jnp.float32)
        t = t_ref[idx, :].astype(jnp.float32)
        loss = _loss_f32(x, t)
        if valid_rows is not None:
            row = lax.broadcasted_iota(jnp.int32, (chunk_rows, LANES), 0)
            loss = jnp.where(row + r0 < valid_rows, loss, 0.0)
        # (chunk_rows,128) -> (chunk_rows//8, 8, 128) is a layout-preserving
        # split; the axis-0 sum is element-wise VPU adds into (8, 128).
        return carry + loss.reshape(chunk_rows // 8, 8, LANES).sum(axis=0)

    def block_sum(valid_rows=None):
        return lax.fori_loop(
            0, n_chunks,
            lambda c, a: chunk_sum(c, a, valid_rows),
            jnp.zeros((8, LANES), jnp.float32))

    if needs_mask:
        # Only edge / phantom blocks need masking; steady-state blocks take the
        # unmasked branch at runtime.
        valid_rows = rows - block_row0

        @pl.when(valid_rows >= tile_rows)
        def _full_block():
            out_ref[...] += block_sum().reshape(1, 8, LANES)

        @pl.when(valid_rows < tile_rows)
        def _edge_block():
            out_ref[...] += block_sum(valid_rows).reshape(1, 8, LANES)
    else:
        out_ref[...] += block_sum().reshape(1, 8, LANES)


def bce_plus_minus_one(logits, targets_pm1):
    """Mean BCEWithLogits over all elements, targets given in {-1, +1}."""
    assert logits.shape == targets_pm1.shape
    n_valid = logits.size
    assert n_valid > 0

    x_flat = logits.reshape(-1)          # layout-compatible reshape: no copy
    t_flat = targets_pm1.reshape(-1)

    rows = n_valid // LANES              # 128-aligned prefix handled in-kernel
    tail = n_valid - rows * LANES        # <128-element remainder handled host-side

    total = jnp.zeros((), jnp.float32)

    if tail:
        # TODO(synk): a fully zero-copy misaligned path would need a manual 1-D
        # DMA kernel; here only the tiny (<128 elem) tail is reduced with jnp.
        tail_x = x_flat[rows * LANES:].astype(jnp.float32)
        tail_t = t_flat[rows * LANES:].astype(jnp.float32)
        total = total + jnp.sum(_loss_f32(tail_x, tail_t))

    if rows > 0:
        if tail:
            x_flat = x_flat[:rows * LANES]
            t_flat = t_flat[:rows * LANES]
        x2d = x_flat.reshape(rows, LANES)
        t2d = t_flat.reshape(rows, LANES)

        rows_per_core = pl.cdiv(rows, NUM_CORES)
        if rows_per_core <= CHUNK_ROWS:
            # 32-row alignment keeps packed (16,128)/(32,128) tiles clean for
            # bf16 / int8 inputs (f32 only needs 8).
            tile_rows = _round_up(rows_per_core, 32)
        else:
            tile_rows = min(MAX_TILE_ROWS, _round_up(rows_per_core, CHUNK_ROWS))
        chunk_rows = min(tile_rows, CHUNK_ROWS)
        n_chunks = tile_rows // chunk_rows

        total_blocks = pl.cdiv(rows, tile_rows)
        steps = pl.cdiv(total_blocks, NUM_CORES)
        needs_mask = (NUM_CORES * steps * tile_rows) != rows

        def in_index(p, j):
            # Clamp phantom blocks (only possible when needs_mask) onto the last
            # real block; their contribution is fully masked to zero in-kernel.
            return (jnp.minimum(p * steps + j, total_blocks - 1), 0)

        kernel = functools.partial(
            _bce_pm1_kernel,
            tile_rows=tile_rows, chunk_rows=chunk_rows, n_chunks=n_chunks,
            steps=steps, rows=rows, needs_mask=needs_mask)

        elems = rows * LANES
        cost = pl.CostEstimate(
            flops=6 * elems,
            transcendentals=2 * elems,
            bytes_accessed=elems * (logits.dtype.itemsize
                                    + targets_pm1.dtype.itemsize)
            + NUM_CORES * 8 * LANES * 4)

        partials = pl.pallas_call(
            kernel,
            out_shape=jax.ShapeDtypeStruct((NUM_CORES, 8, LANES), jnp.float32),
            grid_spec=pltpu.PrefetchScalarGridSpec(
                num_scalar_prefetch=0,
                grid=(NUM_CORES, steps),
                in_specs=[
                    pl.BlockSpec((tile_rows, LANES), in_index),
                    pl.BlockSpec((tile_rows, LANES), in_index),
                ],
                out_specs=pl.BlockSpec((1, 8, LANES), lambda p, j: (p, 0, 0)),
            ),
            compiler_params=pltpu.CompilerParams(
                dimension_semantics=("parallel", "arbitrary"),
                vmem_limit_bytes=32 << 20,
            ),
            cost_estimate=cost,
        )(x2d, t2d)

        total = total + jnp.sum(partials)

    return total / jnp.float32(n_valid)


def _reference(logits, targets_pm1):
    # Spec-faithful: BCEWithLogitsLoss(logits, (targets_pm1 + 1) / 2), mean.
    x = logits.astype(jnp.float32)
    t01 = (targets_pm1.astype(jnp.float32) + 1.0) * 0.5
    loss = jnp.maximum(x, 0.0) - x * t01 + jnp.log1p(jnp.exp(-jnp.abs(x)))
    return jnp.mean(loss)


if __name__ == "__main__":
    key = jax.random.PRNGKey(0)
    k1, k2 = jax.random.split(key)

    # Small NCHW-shaped logits, targets in {-1, +1}.
    x_shape = (2, 4, 16, 16)
    logits = jax.random.normal(k1, x_shape, dtype=jnp.float32)
    targets_pm1 = (
        2.0 * jax.random.bernoulli(k2, 0.5, x_shape).astype(jnp.float32) - 1.0
    )

    loss = bce_plus_minus_one(logits, targets_pm1)
    loss = jax.block_until_ready(loss)

    ref = _reference(logits, targets_pm1)
    assert jnp.allclose(loss, ref, rtol=1e-5, atol=1e-5), (loss, ref)

    print("KERNEL_OK")
</pallas_src>

<mosaic_0001>
module attributes {stable_mosaic.version = 11 : i64} {
  func.func @_bce_pm1_kernel(%arg0: i32, %arg1: i32, %arg2: memref<32x128xf32, #tpu.memory_space<vmem>>, %arg3: memref<32x128xf32, #tpu.memory_space<vmem>>, %arg4: memref<1x8x128xf32, #tpu.memory_space<vmem>>) attributes {dimension_semantics = [#tpu.dimension_semantics<parallel>, #tpu.dimension_semantics<arbitrary>], iteration_bounds = array<i64: 2, 1>, scalar_prefetch = 0 : i64, scratch_operands = 0 : i64, tpu.core_type = #tpu.core_type<tc>, window_params = [{transform_indices = @transform_0, window_bounds = array<i64: 32, 128>}, {transform_indices = @transform_1, window_bounds = array<i64: 32, 128>}, {transform_indices = @transform_2, window_bounds = array<i64: 1, 8, 128>}]} {
    %c0_i32 = arith.constant 0 : i32
    %0 = arith.cmpi eq, %arg1, %c0_i32 : i32
    %1 = arith.extui %0 : i1 to i32
    %c0_i32_0 = arith.constant 0 : i32
    %2 = arith.cmpi ne, %1, %c0_i32_0 : i32
    scf.if %2 {
      %cst = arith.constant 0.000000e+00 : f32
      %13 = vector.broadcast %cst : f32 to vector<1x8x128xf32>
      %c0 = arith.constant 0 : index
      %c0_5 = arith.constant 0 : index
      %c0_6 = arith.constant 0 : index
      %14 = vector.load %arg4[%c0, %c0_5, %c0_6] : memref<1x8x128xf32, #tpu.memory_space<vmem>>, vector<1x8x128xf32>
      tpu.vector_store %arg4[%c0, %c0_5, %c0_6], %13 {strides = array<i32>} : memref<1x8x128xf32, #tpu.memory_space<vmem>>, vector<1x8x128xf32>,
    } else {
    }
    %c1_i32 = arith.constant 1 : i32
    %3 = arith.muli %arg0, %c1_i32 : i32
    %4 = arith.addi %3, %arg1 : i32
    %c32_i32 = arith.constant 32 : i32
    %5 = arith.muli %4, %c32_i32 : i32
    %c16_i32 = arith.constant 16 : i32
    %6 = arith.subi %c16_i32, %5 : i32
    %c32_i32_1 = arith.constant 32 : i32
    %7 = arith.cmpi sge, %6, %c32_i32_1 : i32
    %8 = arith.extui %7 : i1 to i32
    %c0_i32_2 = arith.constant 0 : i32
    %9 = arith.cmpi ne, %8, %c0_i32_2 : i32
    scf.if %9 {
      %c0 = arith.constant 0 : index
      %c0_5 = arith.constant 0 : index
      %c0_6 = arith.constant 0 : index
      %13 = vector.load %arg4[%c0, %c0_5, %c0_6] : memref<1x8x128xf32, #tpu.memory_space<vmem>>, vector<1x8x128xf32>
      %cst = arith.constant 0.000000e+00 : f32
      %14 = vector.broadcast %cst : f32 to vector<8x128xf32>
      %c0_i32_7 = arith.constant 0 : i32
      %c32_i32_8 = arith.constant 32 : i32
      %15 = arith.muli %c0_i32_7, %c32_i32_8 : i32
      %16 = tpu.assume_multiple %15, 32 : i32
      %17 = arith.index_cast %16 : i32 to index
      %c0_9 = arith.constant 0 : index
      %18 = vector.load %arg2[%17, %c0_9] : memref<32x128xf32, #tpu.memory_space<vmem>>, vector<32x128xf32>
      %19 = arith.index_cast %16 : i32 to index
      %c0_10 = arith.constant 0 : index
      %20 = vector.load %arg3[%19, %c0_10] : memref<32x128xf32, #tpu.memory_space<vmem>>, vector<32x128xf32>
      %21 = math.absf %18 : vector<32x128xf32>
      %22 = arith.mulf %18, %20 : vector<32x128xf32>
      %23 = arith.subf %21, %22 : vector<32x128xf32>
      %cst_11 = arith.constant 5.000000e-01 : f32
      %24 = vector.broadcast %cst_11 : f32 to vector<32x128xf32>
      %25 = arith.mulf %24, %23 : vector<32x128xf32>
      %cst_12 = arith.constant 0.000000e+00 : f32
      %26 = vector.broadcast %cst_12 : f32 to vector<32x128xf32>
      %27 = arith.subf %26, %21 : vector<32x128xf32>
      %28 = math.exp %27 : vector<32x128xf32>
      %29 = math.log1p %28 : vector<32x128xf32>
      %30 = arith.addf %25, %29 : vector<32x128xf32>
      %31 = vector.shape_cast %30 : vector<32x128xf32> to vector<4x8x128xf32>
      %cst_13 = arith.constant dense<0.000000e+00> : vector<8x128xf32>
      %32 = vector.multi_reduction <add>, %31, %cst_13 [0] : vector<4x8x128xf32> to vector<8x128xf32>
      %33 = arith.addf %14, %32 : vector<8x128xf32>
      %c1_i32_14 = arith.constant 1 : i32
      %34 = vector.shape_cast %33 : vector<8x128xf32> to vector<1x8x128xf32>
      %35 = arith.addf %13, %34 : vector<1x8x128xf32>
      %c0_15 = arith.constant 0 : index
      %c0_16 = arith.constant 0 : index
      %c0_17 = arith.constant 0 : index
      %36 = vector.load %arg4[%c0_15, %c0_16, %c0_17] : memref<1x8x128xf32, #tpu.memory_space<vmem>>, vector<1x8x128xf32>
      tpu.vector_store %arg4[%c0_15, %c0_16, %c0_17], %35 {strides = array<i32>} : memref<1x8x128xf32, #tpu.memory_space<vmem>>, vector<1x8x128xf32>,
    } else {
    }
    %c32_i32_3 = arith.constant 32 : i32
    %10 = arith.cmpi slt, %6, %c32_i32_3 : i32
    %11 = arith.extui %10 : i1 to i32
    %c0_i32_4 = arith.constant 0 : i32
    %12 = arith.cmpi ne, %11, %c0_i32_4 : i32
    scf.if %12 {
      %c0 = arith.constant 0 : index
      %c0_5 = arith.constant 0 : index
      %c0_6 = arith.constant 0 : index
      %13 = vector.load %arg4[%c0, %c0_5, %c0_6] : memref<1x8x128xf32, #tpu.memory_space<vmem>>, vector<1x8x128xf32>
      %cst = arith.constant 0.000000e+00 : f32
      %14 = vector.broadcast %cst : f32 to vector<8x128xf32>
      %c0_i32_7 = arith.constant 0 : i32
      %c32_i32_8 = arith.constant 32 : i32
      %15 = arith.muli %c0_i32_7, %c32_i32_8 : i32
      %16 = tpu.assume_multiple %15, 32 : i32
      %17 = arith.index_cast %16 : i32 to index
      %c0_9 = arith.constant 0 : index
      %18 = vector.load %arg2[%17, %c0_9] : memref<32x128xf32, #tpu.memory_space<vmem>>, vector<32x128xf32>
      %19 = arith.index_cast %16 : i32 to index
      %c0_10 = arith.constant 0 : index
      %20 = vector.load %arg3[%19, %c0_10] : memref<32x128xf32, #tpu.memory_space<vmem>>, vector<32x128xf32>
      %21 = math.absf %18 : vector<32x128xf32>
      %22 = arith.mulf %18, %20 : vector<32x128xf32>
      %23 = arith.subf %21, %22 : vector<32x128xf32>
      %cst_11 = arith.constant 5.000000e-01 : f32
      %24 = vector.broadcast %cst_11 : f32 to vector<32x128xf32>
      %25 = arith.mulf %24, %23 : vector<32x128xf32>
      %cst_12 = arith.constant 0.000000e+00 : f32
      %26 = vector.broadcast %cst_12 : f32 to vector<32x128xf32>
      %27 = arith.subf %26, %21 : vector<32x128xf32>
      %28 = math.exp %27 : vector<32x128xf32>
      %29 = math.log1p %28 : vector<32x128xf32>
      %30 = arith.addf %25, %29 : vector<32x128xf32>
      %31 = tpu.iota {dimensions = array<i32: 0>} : vector<32x128xi32>
      %32 = vector.broadcast %15 : i32 to vector<32x128xi32>
      %33 = arith.addi %31, %32 : vector<32x128xi32>
      %34 = vector.broadcast %6 : i32 to vector<32x128xi32>
      %35 = arith.cmpi slt, %33, %34 : vector<32x128xi32>
      %cst_13 = arith.constant 0.000000e+00 : f32
      %36 = vector.broadcast %cst_13 : f32 to vector<32x128xf32>
      %37 = arith.select %35, %30, %36 : vector<32x128xi1>, vector<32x128xf32>
      %38 = vector.shape_cast %37 : vector<32x128xf32> to vector<4x8x128xf32>
      %cst_14 = arith.constant dense<0.000000e+00> : vector<8x128xf32>
      %39 = vector.multi_reduction <add>, %38, %cst_14 [0] : vector<4x8x128xf32> to vector<8x128xf32>
      %40 = arith.addf %14, %39 : vector<8x128xf32>
      %c1_i32_15 = arith.constant 1 : i32
      %41 = vector.shape_cast %40 : vector<8x128xf32> to vector<1x8x128xf32>
      %42 = arith.addf %13, %41 : vector<1x8x128xf32>
      %c0_16 = arith.constant 0 : index
      %c0_17 = arith.constant 0 : index
      %c0_18 = arith.constant 0 : index
      %43 = vector.load %arg4[%c0_16, %c0_17, %c0_18] : memref<1x8x128xf32, #tpu.memory_space<vmem>>, vector<1x8x128xf32>
      tpu.vector_store %arg4[%c0_16, %c0_17, %c0_18], %42 {strides = array<i32>} : memref<1x8x128xf32, #tpu.memory_space<vmem>>, vector<1x8x128xf32>,
    } else {
    }
    return
  }
  func.func @transform_0(%arg0: i32, %arg1: i32) -> (i32, i32) {
    %c1_i32 = arith.constant 1 : i32
    %0 = arith.muli %arg0, %c1_i32 : i32
    %1 = arith.addi %0, %arg1 : i32
    %c0_i32 = arith.constant 0 : i32
    %2 = arith.minsi %1, %c0_i32 : i32
    %c0_i32_0 = arith.constant 0 : i32
    %c0_i32_1 = arith.constant 0 : i32
    return %2, %c0_i32_0 : i32, i32
  }
  func.func @transform_1(%arg0: i32, %arg1: i32) -> (i32, i32) {
    %c1_i32 = arith.constant 1 : i32
    %0 = arith.muli %arg0, %c1_i32 : i32
    %1 = arith.addi %0, %arg1 : i32
    %c0_i32 = arith.constant 0 : i32
    %2 = arith.minsi %1, %c0_i32 : i32
    %c0_i32_0 = arith.constant 0 : i32
    %c0_i32_1 = arith.constant 0 : i32
    return %2, %c0_i32_0 : i32, i32
  }
  func.func @transform_2(%arg0: i32, %arg1: i32) -> (i32, i32, i32) {
    %c0_i32 = arith.constant 0 : i32
    %c0_i32_0 = arith.constant 0 : i32
    %c0_i32_1 = arith.constant 0 : i32
    return %arg0, %c0_i32, %c0_i32_0 : i32, i32, i32
  }
}

</mosaic_0001>

<bundles_post_ra>
// kernel: tpu_custom_call.1
= control target key start
LH: loop header
LB: loop body
LE: loop exit
PB: predicated region body
PF: predicated region fallthrough
CT: control target
= control target key end

     0   :  { %7 = vsyncpa [#allocation3], 0  ;;  %s1132_s0 = inlined_call_operand.hbm [shape: f32[16,128], index: 0, kind: input, shape index: {}]   ;;  %s1133_s1 = inlined_call_operand.hbm [shape: f32[16,128], index: 1, kind: input, shape index: {}]   ;;  %s1134_s2 = inlined_call_operand.hbm [shape: f32[2,8,128], index: 2, kind: output, shape index: {}]  }
   0x1   :  { %9 = vsyncpa [#allocation3 + $0x1], 0 }
   0x2   :  { %10 = vsyncpa [#allocation6], 0 }
   0x3   :  { %12 = vsyncpa [#allocation6 + $0x1], 0 }
   0x4   :  { %13 = vsyncpa [#allocation4], 0 }
   0x5   :  { %15 = vsyncpa [#allocation4 + $0x1], 0  ;;  %s904_s9 = smov 0   ;;  %s906_s10 = smov 0  }
   0x6   :  { %s908_s11 = smov 0   ;;  %s910_s12 = smov 0  }
   0x7   :  { %s912_s13 = smov 0   ;;  %s914_s14 = smov 0  }
   0x8   :  { %s916_s15 = smov 0   ;;  %s918_s16 = smov 0  }
   0x9 LB: > { %s563_s17 = sadd.s32 4294967295, %s879_s16   ;;  %s564_s18 = sadd.s32 4294967294, %s879_s16   ;;  %s879_s16 = sphi %s918_s16, %s21_s16   ;;  %s875_s15 = sphi %s916_s15, %s1154_s15   ;;  %s871_s14 = sphi %s914_s14, %s1153_s14   ;;  %s867_s13 = sphi %s912_s13, %s1122_s13   ;;  %s863_s12 = sphi %s910_s12, %s1152_s12   ;;  %s859_s11 = sphi %s908_s11, %s1151_s11   ;;  %s855_s10 = sphi %s906_s10, %s1150_s10   ;;  %s851_s9 = sphi %s904_s9, %s1149_s9  }
   0xa   : > { %s33_s19 = sadd.s32 1, %s875_s15  ;;  %p848_p1 = scmp.ne.s32.totalorder %s867_s13, 0 }
   0xb   : > { %p35_p0 = scmp.ge.s32.totalorder %s33_s19, 2  ;;  %p54_p2 = scmp.eq.s32.totalorder %s879_s16, 0 }
   0xc   : > { %p59_p3 = scmp.ne.s32.totalorder %s867_s13, %s863_s12  ;;  %p60_p5 = scmp.eq.s32.totalorder %s563_s17, 0 }
   0xd   : > { %s1156_s19 = smov (%p35_p0, %s33_s19), 0  ;;  %p950_p4 = por %p848_p1, %p54_p2 }
   0xe   : > { %p954_p6 = por %p60_p5, %p59_p3  ;;  %s101_s22 = ssub.s32 %s875_s15, %s1156_s19 }
   0xf   : > { %p102_p7 = scmp.eq.s32.totalorder %s101_s22, 0  ;;  %s104_s23 = sadd.s32 1, %s859_s11 }
  0x10   : > { %p114_p8 = scmp.ne.s32.totalorder %s859_s11, %s855_s10  ;;  %p115_p9 = scmp.eq.s32.totalorder %s563_s17, 1 }
  0x11   : > { %s962_s24 = scalar_select %p102_p7, %s859_s11, %s104_s23  }
  0x12   : > { %p120_p10 = scmp.ne.s32.totalorder %s855_s10, %s851_s9  ;;  %p121_p11 = scmp.eq.s32.totalorder %s564_s18, 1 }
  0x13   : > { %p968_p12 = por %p115_p9, %p114_p8  ;;  %p1135_p0 = scmp.ge.s32.totalorder %s879_s16, 2 }
  0x14   : > { %p972_p13 = por %p121_p11, %p120_p10 }
  0x15   : > { %137 = sbr.rel (%p1135_p0) target bundleno = 82 (0x52), region = 16 }
  0x1c   : > { %140 = sbr.rel (!%p950_p4) target bundleno = 55 (0x37), region = 20 }
  0x23   : > { %154 = vsyncadd [#allocation3], 256  ;;  %s881_s27 = smov [#allocation2]   ;;  %s712_s3 = scalar_lea.hbm %s1132_s0, 256 }
  0x24   : > { %s159_s28 = sshll.u32 %s881_s27, 4  ;;  %p713_p1 = scmp.ne.s32.totalorder %s1132_s0, %s712_s3  ;;  %s160_s28 = int_to_ptr.vmem [resolvable:$true] %s159_s28 }
  0x25   : > { %p718_p2 = scmp.lt.u32.totalorder %s712_s3, %s712_s3  ;;  %p720_p3 = scmp.lt.u32.totalorder %s712_s3, %s1132_s0 }
  0x27   : > { %p721_p5 = por %p720_p3, %p718_p2 }
  0x29   : > { %p722_p7 = pnand %p721_p5, %p713_p1 }
  0x2b   : > { %725 = shalt.err (!%p722_p7)
}
  0x2c   : > { %s726_s8 = scalar_lea.vmem %s160_s28, 256  ;;  %s732_s12 = scalar_lea.vmem %s160_s28, 1024 }
  0x2d   : > { %p727_p8 = scmp.ne.s32.totalorder %s160_s28, %s726_s8  ;;  %p733_p9 = scmp.lt.s32.totalorder %s160_s28, %s160_s28 }
  0x2e   : > { %p734_p10 = scmp.lt.s32.totalorder %s732_s12, %s726_s8 }
  0x30   : > { %p735_p11 = por %p734_p10, %p733_p9 }
  0x32   : > { %p736_p0 = pnand %p735_p11, %p727_p8 }
  0x34   : > { %739 = shalt.err (!%p736_p0)
}
  0x35   : > { %s882_s17 = smov 128   ;;  %s883_s18 = smov 8  }
  0x36   : > { %165 = dma.hbm_to_vmem [thread:$0]  %s1132_s0, 256, %s160_s28, [#allocation3], %s882_s17, %s882_s17, %s883_s18  }
  0x37 PF: > { %168 = sbr.rel (!%p950_p4) target bundleno = 82 (0x52), region = 24 }
  0x3e   : > { %182 = vsyncadd [#allocation6], 256  ;;  %s884_s27 = smov [#allocation5]   ;;  %s740_s4 = scalar_lea.hbm %s1133_s1, 256 }
  0x3f   : > { %s187_s29 = sshll.u32 %s884_s27, 4  ;;  %p741_p0 = scmp.ne.s32.totalorder %s1133_s1, %s740_s4  ;;  %s188_s29 = int_to_ptr.vmem [resolvable:$true] %s187_s29 }
  0x40   : > { %p746_p1 = scmp.lt.u32.totalorder %s740_s4, %s740_s4  ;;  %p748_p2 = scmp.lt.u32.totalorder %s740_s4, %s1133_s1 }
  0x42   : > { %p749_p3 = por %p748_p2, %p746_p1 }
  0x44   : > { %p750_p5 = pnand %p749_p3, %p741_p0 }
  0x46   : > { %753 = shalt.err (!%p750_p5)
}
  0x47   : > { %s754_s20 = scalar_lea.vmem %s188_s29, 256  ;;  %s760_s28 = scalar_lea.vmem %s188_s29, 1024 }
  0x48   : > { %p755_p4 = scmp.ne.s32.totalorder %s188_s29, %s754_s20  ;;  %p761_p7 = scmp.lt.s32.totalorder %s188_s29, %s188_s29 }
  0x49   : > { %p762_p8 = scmp.lt.s32.totalorder %s760_s28, %s754_s20 }
  0x4b   : > { %p763_p9 = por %p762_p8, %p761_p7 }
  0x4d   : > { %p764_p10 = pnand %p763_p9, %p755_p4 }
  0x4f   : > { %767 = shalt.err (!%p764_p10)
}
  0x50   : > { %s885_s12 = smov 128   ;;  %s886_s17 = smov 8  }
  0x51   : > { %193 = dma.hbm_to_vmem [thread:$0]  %s1133_s1, 256, %s188_s29, [#allocation6], %s885_s12, %s885_s12, %s886_s17  }
  0x52 PF: > { %p581_p11 = scmp.ge.s32.totalorder %s879_s16, 1  ;;  %p195_p0 = scmp.lt.s32.totalorder %s879_s16, 3 }
  0x54   : > { %p196_p1 = pnand %p581_p11, %p195_p0 }
  0x55   : > { %s201_s23 = sand.u32 (!%p196_p1), 1, %s867_s13  }
  0x56   : > { %199 = sbr.rel (%p196_p1) target bundleno = 217 (0xd9), region = 28  ;;  %s582_s27 = sshll.u32 (!%p196_p1), %s201_s23, 5 }
  0x57   : > { %s202_s30 = scalar_lea.sflag (!%p196_p1), [#allocation3], %s201_s23  ;;  %s1010_s3 = scalar_lea.vmem (!%p196_p1), [#allocation2], %s582_s27 }
  0x5d   : > { %833 = dma.done.wait (%p954_p6), %s202_s30, 512  }
  0x5e   : > { %835 = vsyncadd (%p954_p6), %s202_s30, 4294966784  ;;  %s211_s29 = scalar_lea.sflag [#allocation6], %s201_s23  ;;  %s1016_s4 = scalar_lea.vmem [#allocation5], %s582_s27 }
  0x5f   : > { %837 = dma.done.wait (%p954_p6), %s211_s29, 512  }
  0x60   : > { %839 = vsyncadd (%p954_p6), %s211_s29, 4294966784  ;;  %s237_s5 = sand.u32 1, %s855_s10   ;;  %s585_s6 = sshll.u32 %s871_s14, 5  ;;  %v887_v0 = vmov 0.0  }
  0x61   : > { %s584_s7 = sshll.u32 %s237_s5, 3  ;;  %s1026_s8 = ssub.s32 16, %s585_s6 }
  0x62   : > { %s1028_s20 = scalar_lea.vmem [#allocation7], %s584_s7  ;;  %p586_p2 = scmp.lt.s32.totalorder %s1026_s8, 32 }
  0x63   : > { %256 = vst [vmem:[%s1028_s20] sm:$0xff] %v887_v0  ;;  %v265_v1 = vld [vmem:[%s1010_s3] sm:$0xff] (!%p586_p2)  ;;  %v266_v2 = vld [vmem:[%s1010_s3 + $0x8] sm:$0xff] (!%p586_p2)  ;;  %v267_v3 = vld [vmem:[%s1010_s3 + $0x10] sm:$0xff] (!%p586_p2) }
  0x64   : > { %263 = sbr.rel (%p586_p2) target bundleno = 145 (0x91), region = 44  ;;  %v268_v4 = vld [vmem:[%s1010_s3 + $0x18] sm:$0xff] (!%p586_p2)  ;;  %v273_v5 = vand.u32 (!%p586_p2), 2147483647, %v265_v1  ;;  %v274_v6 = vand.u32 (!%p586_p2), 2147483647, %v266_v2 }
  0x65   : > { %v275_v7 = vand.u32 (!%p586_p2), 2147483647, %v267_v3  ;;  %v276_v8 = vand.u32 (!%p586_p2), 2147483647, %v268_v4  ;;  %v269_v21 = vld [vmem:[%s1016_s4] sm:$0xff] (!%p586_p2)  ;;  %v270_v24 = vld [vmem:[%s1016_s4 + $0x8] sm:$0xff] (!%p586_p2) }
  0x66   : > { %v289_v9 = vsub.f32 (!%p586_p2), 0.0, %v273_v5  ;;  %v290_v10 = vsub.f32 (!%p586_p2), 0.0, %v274_v6  ;;  %v271_v26 = vld [vmem:[%s1016_s4 + $0x10] sm:$0xff] (!%p586_p2)  ;;  %v272_v28 = vld [vmem:[%s1016_s4 + $0x18] sm:$0xff] (!%p586_p2)  ;;  %v277_v29 = vmul.f32 (!%p586_p2), %v269_v21, %v265_v1  ;;  %v278_v32 = vmul.f32 (!%p586_p2), %v270_v24, %v266_v2 }
  0x67   : > { %v291_v11 = vsub.f32 (!%p586_p2), 0.0, %v275_v7  ;;  %v292_v12 = vsub.f32 (!%p586_p2), 0.0, %v276_v8  ;;  %v279_v34 = vmul.f32 (!%p586_p2), %v271_v26, %v267_v3  ;;  %v280_v35 = vmul.f32 (!%p586_p2), %v272_v28, %v268_v4 }
  0x68   : > { %v293_v13 = vmul.f32 (!%p586_p2), 1.442695, %v289_v9  ;;  %v295_v14 = vmul.f32 (!%p586_p2), 1.442695, %v290_v10  ;;  %v281_v38 = vsub.f32 (!%p586_p2), %v273_v5, %v277_v29  ;;  %v282_v41 = vsub.f32 (!%p586_p2), %v274_v6, %v278_v32 }
  0x69   : > { %v297_v15 = vmul.f32 (!%p586_p2), 1.442695, %v291_v11  ;;  %v299_v16 = vmul.f32 (!%p586_p2), 1.442695, %v292_v12  ;;  %v283_v44 = vsub.f32 (!%p586_p2), %v275_v7, %v279_v34  ;;  %v284_v46 = vsub.f32 (!%p586_p2), %v276_v8, %v280_v35 }
  0x6a   : > { %680 = vpow2.f32 (!%p586_p2), %v293_v13  ;;  %v285_v50 = vmul.f32 (!%p586_p2), 0.5, %v281_v38  ;;  %v286_v55 = vmul.f32 (!%p586_p2), 0.5, %v282_v41  ;;  %v264_v13 = vld [vmem:[%s1028_s20] sm:$0xff] (!%p586_p2) }
  0x6b   : > { %682 = vpow2.f32 %v295_v14  ;;  %v287_v60 = vmul.f32 0.5, %v283_v44  ;;  %v288_v2 = vmul.f32 0.5, %v284_v46 }
  0x6c   : > { %684 = vpow2.f32 %v297_v15 }
  0x6d   : > { %686 = vpow2.f32 %v299_v16 }
  0x74   : > { %v681_v17 = vpop.eup %680 }
  0x75   : > { %v683_v18 = vpop.eup %682  ;;  %v301_v19 = vadd.f32 1.0, %v681_v17  ;;  %v304_v27 = vmul.f32 -0.5, %v681_v17  ;;  %v307_v39 = vand.u32 2147483647, %v681_v17 }
  0x76   : > { %v685_v20 = vpop.eup %684  ;;  %v310_v22 = vadd.f32 1.0, %v683_v18  ;;  %v313_v30 = vmul.f32 -0.5, %v683_v18  ;;  %v316_v42 = vand.u32 2147483647, %v683_v18 }
  0x77   : > { %v687_v23 = vpop.eup %686  ;;  %688 = vlog2.f32 %v301_v19  ;;  %v319_v25 = vadd.f32 1.0, %v685_v20  ;;  %v322_v33 = vmul.f32 -0.5, %v685_v20  ;;  %v305_v36 = vadd.f32 1.0, %v304_v27 }
  0x78   : > { %690 = vlog2.f32 %v310_v22  ;;  %v328_v31 = vadd.f32 1.0, %v687_v23  ;;  %v331_v37 = vmul.f32 -0.5, %v687_v23  ;;  %v314_v40 = vadd.f32 1.0, %v313_v30 }
  0x79   : > { %692 = vlog2.f32 %v319_v25  ;;  %v323_v43 = vadd.f32 1.0, %v322_v33  ;;  %v325_v45 = vand.u32 2147483647, %v685_v20  ;;  %v306_v47 = vmul.f32 %v681_v17, %v305_v36 }
  0x7a   : > { %694 = vlog2.f32 %v328_v31  ;;  %v332_v48 = vadd.f32 1.0, %v331_v37  ;;  %vm1040_vm0 = vcmp.lt.f32.partialorder %v307_v39, 0.0004427343  ;;  %v315_v52 = vmul.f32 %v683_v18, %v314_v40 }
  0x7b   : > { %v334_v53 = vand.u32 2147483647, %v687_v23  ;;  %vm1044_vm1 = vcmp.lt.f32.partialorder %v316_v42, 0.0004427343  ;;  %v324_v58 = vmul.f32 %v685_v20, %v323_v43  ;;  %vm326_vm2 = vcmp.lt.f32.partialorder %v325_v45, 0.0004427343 }
  0x7c   : > { %v333_v0 = vmul.f32 %v687_v23, %v332_v48 }
  0x7d   : > { %vm335_vm3 = vcmp.lt.f32.partialorder %v334_v53, 0.0004427343 }
  0x81   : > { %v689_v49 = vpop.eup %688 }
  0x82   : > { %v691_v54 = vpop.eup %690  ;;  %v303_v56 = vmul.f32 0.6931472, %v689_v49 }
  0x83   : > { %v693_v59 = vpop.eup %692  ;;  %v312_v61 = vmul.f32 0.6931472, %v691_v54 }
  0x84   : > { %v309_v62 = vsel %vm1040_vm0, %v306_v47, %v303_v56  ;;  %v321_v63 = vmul.f32 0.6931472, %v693_v59  ;;  %v695_v1 = vpop.eup %694 }
  0x85   : > { %v318_v3 = vsel %vm1044_vm1, %v315_v52, %v312_v61  ;;  %v337_v4 = vadd.f32 %v309_v62, %v285_v50  ;;  %v330_v6 = vmul.f32 0.6931472, %v695_v1 }
  0x86   : > { %v327_v5 = vsel %vm326_vm2, %v324_v58, %v321_v63  ;;  %v338_v7 = vadd.f32 %v318_v3, %v286_v55 }
  0x87   : > { %v339_v8 = vadd.f32 %v327_v5, %v287_v60  ;;  %v336_v9 = vsel %vm335_vm3, %v333_v0, %v330_v6 }
  0x88   : > { %v341_v10 = vadd.f32 %v338_v7, %v337_v4  ;;  %v340_v11 = vadd.f32 %v336_v9, %v288_v2 }
  0x8a   : > { %v342_v12 = vadd.f32 %v341_v10, %v339_v8 }
  0x8c   : > { %v343_v14 = vadd.f32 %v342_v12, %v340_v11 }
  0x8e   : > { %v345_v15 = vadd.f32 %v343_v14, %v264_v13 }
  0x90   : > { %346 = vst [vmem:[%s1028_s20] sm:$0xff] %v345_v15 }
  0x91 PF: > { %p587_p6 = scmp.ge.s32.totalorder %s1026_s8, 32 }
  0x92   : > { %v352_v16 = vld [vmem:[%s1010_s3] sm:$0xff] (!%p587_p6)  ;;  %v353_v17 = vld [vmem:[%s1010_s3 + $0x8] sm:$0xff] (!%p587_p6)  ;;  %v354_v18 = vld [vmem:[%s1010_s3 + $0x10] sm:$0xff] (!%p587_p6)  ;;  %v428_v49 = vlaneseq (!%p587_p6)  ;;  %v433_v1 = vstv (!%p587_p6), %s1026_s8 }
  0x93   : > { %350 = sbr.rel (%p587_p6) target bundleno = 193 (0xc1), region = 48  ;;  %v355_v19 = vld [vmem:[%s1010_s3 + $0x18] sm:$0xff] (!%p587_p6)  ;;  %v360_v20 = vand.u32 (!%p587_p6), 2147483647, %v352_v16  ;;  %v361_v21 = vand.u32 (!%p587_p6), 2147483647, %v353_v17 }
  0x94   : > { %v362_v22 = vand.u32 (!%p587_p6), 2147483647, %v354_v18  ;;  %v363_v23 = vand.u32 (!%p587_p6), 2147483647, %v355_v19  ;;  %v356_v33 = vld [vmem:[%s1016_s4] sm:$0xff] (!%p587_p6)  ;;  %v357_v35 = vld [vmem:[%s1016_s4 + $0x8] sm:$0xff] (!%p587_p6) }
  0x95   : > { %v376_v24 = vsub.f32 (!%p587_p6), 0.0, %v360_v20  ;;  %v377_v25 = vsub.f32 (!%p587_p6), 0.0, %v361_v21  ;;  %v358_v36 = vld [vmem:[%s1016_s4 + $0x10] sm:$0xff] (!%p587_p6)  ;;  %v364_v41 = vmul.f32 (!%p587_p6), %v356_v33, %v352_v16  ;;  %v359_v43 = vld [vmem:[%s1016_s4 + $0x18] sm:$0xff] (!%p587_p6)  ;;  %v365_v44 = vmul.f32 (!%p587_p6), %v357_v35, %v353_v17 }
  0x96   : > { %v378_v26 = vsub.f32 (!%p587_p6), 0.0, %v362_v22  ;;  %v379_v27 = vsub.f32 (!%p587_p6), 0.0, %v363_v23  ;;  %v366_v45 = vmul.f32 (!%p587_p6), %v358_v36, %v354_v18  ;;  %v367_v51 = vmul.f32 (!%p587_p6), %v359_v43, %v355_v19 }
  0x97   : > { %v380_v28 = vmul.f32 (!%p587_p6), 1.442695, %v376_v24  ;;  %v382_v29 = vmul.f32 (!%p587_p6), 1.442695, %v377_v25  ;;  %v368_v52 = vsub.f32 (!%p587_p6), %v360_v20, %v364_v41  ;;  %v369_v53 = vsub.f32 (!%p587_p6), %v361_v21, %v365_v44 }
  0x98   : > { %v384_v30 = vmul.f32 (!%p587_p6), 1.442695, %v378_v26  ;;  %v386_v31 = vmul.f32 (!%p587_p6), 1.442695, %v379_v27  ;;  %v370_v54 = vsub.f32 (!%p587_p6), %v362_v22, %v366_v45  ;;  %v429_v59 = vshrl.u32 (!%p587_p6), %v428_v49, 7 }
  0x99   : > { %696 = vpow2.f32 (!%p587_p6), %v380_v28  ;;  %v371_v62 = vsub.f32 (!%p587_p6), %v363_v23, %v367_v51  ;;  %v372_v63 = vmul.f32 (!%p587_p6), 0.5, %v368_v52  ;;  %v373_v2 = vmul.f32 (!%p587_p6), 0.5, %v369_v53 }
  0x9a   : > { %698 = vpow2.f32 %v382_v29  ;;  %v374_v3 = vmul.f32 0.5, %v370_v54  ;;  %v430_v10 = vadd.s32 8, %v429_v59  ;;  %v431_v15 = vadd.s32 16, %v429_v59 }
  0x9b   : > { %700 = vpow2.f32 %v384_v30  ;;  %v375_v17 = vmul.f32 0.5, %v371_v62  ;;  %v432_v19 = vadd.s32 24, %v429_v59  ;;  %vm434_vm7 = vcmp.lt.s32.totalorder %v429_v59, %v433_v1 }
  0x9c   : > { %702 = vpow2.f32 %v386_v31  ;;  %vm435_vm9 = vcmp.lt.s32.totalorder %v430_v10, %v433_v1  ;;  %vm436_vm10 = vcmp.lt.s32.totalorder %v431_v15, %v433_v1 }
  0x9d   : > { %vm437_vm11 = vcmp.lt.s32.totalorder %v432_v19, %v433_v1 }
  0xa3   : > { %v697_v32 = vpop.eup %696 }
  0xa4   : > { %v699_v34 = vpop.eup %698  ;;  %v388_v37 = vadd.f32 1.0, %v697_v32  ;;  %v391_v46 = vmul.f32 -0.5, %v697_v32  ;;  %v394_v57 = vand.u32 2147483647, %v697_v32 }
  0xa5   : > { %v701_v38 = vpop.eup %700  ;;  %v397_v39 = vadd.f32 1.0, %v699_v34  ;;  %v400_v47 = vmul.f32 -0.5, %v699_v34  ;;  %v403_v60 = vand.u32 2147483647, %v699_v34 }
  0xa6   : > { %v703_v40 = vpop.eup %702  ;;  %704 = vlog2.f32 %v388_v37  ;;  %v406_v42 = vadd.f32 1.0, %v701_v38  ;;  %v409_v50 = vmul.f32 -0.5, %v701_v38  ;;  %v392_v55 = vadd.f32 1.0, %v391_v46 }
  0xa7   : > { %706 = vlog2.f32 %v397_v39  ;;  %v415_v48 = vadd.f32 1.0, %v703_v40  ;;  %v418_v56 = vmul.f32 -0.5, %v703_v40  ;;  %v401_v58 = vadd.f32 1.0, %v400_v47 }
  0xa8   : > { %708 = vlog2.f32 %v406_v42  ;;  %v410_v61 = vadd.f32 1.0, %v409_v50  ;;  %v412_v0 = vand.u32 2147483647, %v701_v38  ;;  %v393_v4 = vmul.f32 %v697_v32, %v392_v55 }
  0xa9   : > { %710 = vlog2.f32 %v415_v48  ;;  %v419_v5 = vadd.f32 1.0, %v418_v56  ;;  %vm1064_vm4 = vcmp.lt.f32.partialorder %v394_v57, 0.0004427343  ;;  %v402_v8 = vmul.f32 %v699_v34, %v401_v58 }
  0xaa   : > { %v421_v9 = vand.u32 2147483647, %v703_v40  ;;  %vm1068_vm5 = vcmp.lt.f32.partialorder %v403_v60, 0.0004427343  ;;  %v411_v14 = vmul.f32 %v701_v38, %v410_v61  ;;  %vm413_vm6 = vcmp.lt.f32.partialorder %v412_v0, 0.0004427343 }
  0xab   : > { %v420_v22 = vmul.f32 %v703_v40, %v419_v5  ;;  %v351_v38 = vld [vmem:[%s1028_s20] sm:$0xff] }
  0xac   : > { %vm422_vm8 = vcmp.lt.f32.partialorder %v421_v9, 0.0004427343 }
  0xb0   : > { %v705_v6 = vpop.eup %704 }
  0xb1   : > { %v707_v11 = vpop.eup %706  ;;  %v390_v12 = vmul.f32 0.6931472, %v705_v6 }
  0xb2   : > { %v709_v16 = vpop.eup %708  ;;  %v399_v18 = vmul.f32 0.6931472, %v707_v11 }
  0xb3   : > { %v396_v20 = vsel %vm1064_vm4, %v393_v4, %v390_v12  ;;  %v408_v21 = vmul.f32 0.6931472, %v709_v16  ;;  %v711_v23 = vpop.eup %710 }
  0xb4   : > { %v405_v24 = vsel %vm1068_vm5, %v402_v8, %v399_v18  ;;  %v424_v25 = vadd.f32 %v396_v20, %v372_v63  ;;  %v417_v27 = vmul.f32 0.6931472, %v711_v23 }
  0xb5   : > { %v414_v26 = vsel %vm413_vm6, %v411_v14, %v408_v21  ;;  %v425_v28 = vadd.f32 %v405_v24, %v373_v2 }
  0xb6   : > { %v426_v29 = vadd.f32 %v414_v26, %v374_v3  ;;  %v438_v30 = vsel %vm434_vm7, %v424_v25, 0.0  ;;  %v423_v31 = vsel %vm422_vm8, %v420_v22, %v417_v27 }
  0xb7   : > { %v439_v32 = vsel %vm435_vm9, %v425_v28, 0.0  ;;  %v427_v33 = vadd.f32 %v423_v31, %v375_v17 }
  0xb8   : > { %v440_v34 = vsel %vm436_vm10, %v426_v29, 0.0  ;;  %v442_v35 = vadd.f32 %v439_v32, %v438_v30 }
  0xb9   : > { %v441_v36 = vsel %vm437_vm11, %v427_v33, 0.0 }
  0xba   : > { %v443_v37 = vadd.f32 %v442_v35, %v440_v34 }
  0xbc   : > { %v444_v39 = vadd.f32 %v443_v37, %v441_v36 }
  0xbe   : > { %v446_v40 = vadd.f32 %v444_v39, %v351_v38 }
  0xc0   : > { %447 = vst [vmem:[%s1028_s20] sm:$0xff] %v446_v40 }
  0xc1 PF: > { %s589_s21 = sshll.u32 %s871_s14, 7  ;;  %s462_s18 = sshll.u32 %s1028_s20, 4  ;;  %s463_s18 = int_to_ptr.vmem [resolvable:$true] %s462_s18 }
  0xc2   : > { %s1082_s17 = scalar_lea.hbm %s1134_s2, %s589_s21  ;;  %s449_s22 = scalar_lea.sflag [#allocation4], %s237_s5 }
  0xc3   : > { %s768_s23 = scalar_lea.vmem %s463_s18, 128  ;;  %s888_s27 = smov [#allocation7]  }
  0xc4   : > { %p769_p3 = scmp.ne.s32.totalorder %s463_s18, %s768_s23  ;;  %s772_s30 = sshll.u32 %s888_s27, 4  ;;  %s773_s30 = int_to_ptr.vmem [resolvable:$false] %s772_s30 }
  0xc5   : > { %s774_s3 = scalar_lea.vmem %s773_s30, 256  ;;  %p775_p7 = scmp.lt.s32.totalorder %s463_s18, %s773_s30 }
  0xc6   : > { %p770_p5 = pnand %p769_p3, %p968_p12  ;;  %p776_p8 = scmp.lt.s32.totalorder %s774_s3, %s768_s23 }
  0xc8   : > { %p771_p4 = pneg %p770_p5  ;;  %p777_p9 = por %p776_p8, %p775_p7 }
  0xca   : > { %p778_p10 = pnand %p777_p9, %p771_p4 }
  0xcc   : > { %781 = shalt.err (!%p778_p10)
}
  0xcd   : > { %s782_s14 = scalar_lea.hbm %s1082_s17, 128  ;;  %s786_s5 = scalar_lea.hbm %s1134_s2, 256 }
  0xce   : > { %p783_p11 = scmp.ne.s32.totalorder %s1082_s17, %s782_s14  ;;  %p787_p2 = scmp.lt.u32.totalorder %s1082_s17, %s1134_s2 }
  0xcf   : > { %p788_p6 = scmp.lt.u32.totalorder %s786_s5, %s782_s14  ;;  %p790_p5 = scmp.lt.u32.totalorder %s782_s14, %s1082_s17 }
  0xd0   : > { %p784_p0 = pnand %p783_p11, %p968_p12 }
  0xd1   : > { %p789_p3 = por %p788_p6, %p787_p2 }
  0xd2   : > { %p785_p1 = pneg %p784_p0 }
  0xd3   : > { %p791_p4 = por %p790_p5, %p789_p3 }
  0xd5   : > { %p792_p7 = pnand %p791_p4, %p785_p1 }
  0xd7   : > { %795 = shalt.err (!%p792_p7)
}
  0xd8   : > { %596 = dma.vmem_to_hbm [thread:$0]  (%p968_p12), %s463_s18, 128, %s1082_s17, %s449_s22  }
  0xd9 PF: > { %s474_s8 = sand.u32 1, %s851_s9   ;;  %p1148_p8 = scmp.ge.s32.totalorder %s879_s16, 2 }
  0xda   : > { %s475_s20 = scalar_lea.sflag [#allocation4], %s474_s8 }
  0xdb   : > { %p599_p9 = pnand %p1148_p8, %p972_p13 }
  0xdd   : > { %841 = dma.done.wait (!%p599_p9), %s475_s20, 128  }
  0xde   : > { %843 = vsyncadd (!%p599_p9), %s475_s20, 4294967168  ;;  %s21_s16 = sadd.s32 1, %s879_s16   ;;  %s1149_s9 = smov %s855_s10 }
  0xdf   : > { %p18_p10 = scmp.ge.s32.totalorder %s21_s16, 4   ;;  %s1150_s10 = smov %s859_s11 }
  0xe0   : > { %s1151_s11 = smov %s962_s24  ;;  %s1152_s12 = smov %s867_s13 }
  0xe1   : > { %s1122_s13 = smov 0   ;;  %s1153_s14 = smov %s875_s15 }
  0xe2   : > { %s1154_s15 = smov %s1156_s19  ;;  %20 = sbr.rel (!%p18_p10) target bundleno = 9 (0x9), region = 98 }
  0xe9   :  { %480 = vsyncpa [#allocation3], 1 }
  0xea   :  { %482 = vsyncpa [#allocation3 + $0x1], 1 }
  0xeb   :  { %483 = vsyncpa [#allocation6], 1 }
  0xec   :  { %485 = vsyncpa [#allocation6 + $0x1], 1 }
  0xed   :  { %486 = vsyncpa [#allocation4], 1 }
  0xee   :  { %488 = vsyncpa [#allocation4 + $0x1], 1 }

</bundles_post_ra>
